<compile_context>
chip_gen: v5e
topology: v5e:2x2
jax: 0.10.0
libtpu: 0.0.40
codegen_flags: <defaults>
</compile_context>

<pallas_src>
import functools
import math

import jax
import jax.numpy as jnp
from jax.experimental import pallas as pl
from jax.experimental.pallas import tpu as pltpu


def _round_up(x, m):
    return ((x + m - 1) // m) * m


def _pick_tile(dim, max_tile=512, align=128):
    """Return (tile, padded_dim) with tile a multiple of `align` dividing padded_dim."""
    padded = _round_up(dim, align)
    if padded <= max_tile:
        return padded, padded
    return max_tile, _round_up(dim, max_tile)


def _lstm_op_kernel(xh_ref, cp_ref, w_ref, c_ref, h_ref, *rest, tn, with_xs):
    """grid = (jn: gate-feature blocks [parallel], k: K-reduction [arbitrary])."""
    if with_xs:
        xs_ref, acc_ref = rest
    else:
        (acc_ref,) = rest

    k = pl.program_id(1)

    @pl.when(k == 0)
    def _():
        acc_ref[...] = jnp.zeros_like(acc_ref)

    # Single fused MXU matmul per step: all 4 gates at once, 4*tn lanes wide.
    acc_ref[...] += jnp.dot(xh_ref[...], w_ref[...],
                            preferred_element_type=jnp.float32)

    @pl.when(k == pl.num_programs(1) - 1)
    def _():
        acc = acc_ref[...]                       # [B_pad, 4*tn], f32
        xs_i = acc[:, 0 * tn:1 * tn]
        xs_f = acc[:, 1 * tn:2 * tn]
        xs_g = acc[:, 2 * tn:3 * tn]
        xs_o = acc[:, 3 * tn:4 * tn]

        if with_xs:
            # Each store is a full [B_pad(=8k), tn(>=128)] tile: unmasked, lane-dense.
            xs_ref[0] = xs_i
            xs_ref[1] = xs_f
            xs_ref[2] = xs_g
            xs_ref[3] = xs_o

        i_g = jax.nn.sigmoid(xs_i)
        f_g = jax.nn.sigmoid(xs_f)
        g_g = jnp.tanh(xs_g)
        o_g = jax.nn.sigmoid(xs_o)

        c = f_g * cp_ref[...] + i_g * g_g
        c_ref[...] = c
        h_ref[...] = o_g * jnp.tanh(c)


def prepare_lstm_op_weights(xOps, hOps, *, compute_dtype=jnp.float32):
    """Pre-permute the 5-D operators into the fused gate-blocked matmul weight.

    Returns w_fused: [Jn, K_pad, 4*tn] where column g*tn + r of block jn is
    gate g, output feature jn*tn + r, and K = IC*ID (x part) followed by
    OC*OD (h part).  Call this ONCE per parameter set — outside any sequence
    loop — so the full-weight transposes/casts are not paid per timestep.
    """
    four, OC, IC, OD, ID = xOps.shape
    assert four == 4 and hOps.shape == (4, OC, OC, OD, OD)
    Kx, N = IC * ID, OC * OD
    K = Kx + N
    tk, K_pad = _pick_tile(K)
    tn, N_pad = _pick_tile(N)
    Jn = N_pad // tn

    # xOps [4, OC, IC, OD, ID] -> [4, IC, ID, OC, OD] -> [4, Kx, N]
    wx = jnp.transpose(xOps, (0, 2, 4, 1, 3)).reshape(4, Kx, N)
    # hOps [4, OC, OC', OD, OD'] -> [4, OC', OD', OC, OD] -> [4, N, N]
    wh = jnp.transpose(hOps, (0, 2, 4, 1, 3)).reshape(4, N, N)
    w = jnp.concatenate([wx, wh], axis=1)                        # [4, K, N]
    w = jnp.pad(w, ((0, 0), (0, K_pad - K), (0, N_pad - N)))
    # -> [4, K_pad, Jn, tn] -> [Jn, K_pad, 4, tn] -> [Jn, K_pad, 4*tn]
    w = w.reshape(4, K_pad, Jn, tn).transpose(2, 1, 0, 3).reshape(Jn, K_pad, 4 * tn)
    return w.astype(compute_dtype)


@functools.partial(jax.jit, static_argnames=("return_xs", "compute_dtype"))
def lstm_op_step(x, c_p, h_p, w_fused, *, return_xs=True,
                 compute_dtype=jnp.float32):
    """One LSTM_Op step. Returns (c, h, Xs) (or (c, h) if return_xs=False)."""
    B, IC, ID = x.shape
    _, OC, OD = c_p.shape
    Kx, N = IC * ID, OC * OD
    K = Kx + N
    tk, K_pad = _pick_tile(K)
    tn, N_pad = _pick_tile(N)
    Jn, Kt = N_pad // tn, K_pad // tk
    B_pad = _round_up(B, 8)          # full sublane tile for the MXU LHS
    assert w_fused.shape == (Jn, K_pad, 4 * tn)

    # Fused LHS: [x | h_p], padded batch rows / K columns are zeros (harmless).
    xh = jnp.concatenate([x.reshape(B, Kx), h_p.reshape(B, N)],
                         axis=1).astype(compute_dtype)
    xh = jnp.pad(xh, ((0, B_pad - B), (0, K_pad - K)))
    cp = jnp.pad(c_p.reshape(B, N).astype(jnp.float32),
                 ((0, B_pad - B), (0, N_pad - N)))

    kernel = functools.partial(_lstm_op_kernel, tn=tn, with_xs=return_xs)

    out_shape = [jax.ShapeDtypeStruct((B_pad, N_pad), jnp.float32),   # c
                 jax.ShapeDtypeStruct((B_pad, N_pad), jnp.float32)]   # h
    out_specs = [pl.BlockSpec((B_pad, tn), lambda jn, k: (0, jn)),
                 pl.BlockSpec((B_pad, tn), lambda jn, k: (0, jn))]
    if return_xs:
        out_shape.append(jax.ShapeDtypeStruct((4, B_pad, N_pad), jnp.float32))
        out_specs.append(pl.BlockSpec((4, B_pad, tn), lambda jn, k: (0, 0, jn)))

    outs = pl.pallas_call(
        kernel,
        out_shape=tuple(out_shape),
        grid_spec=pltpu.PrefetchScalarGridSpec(
            num_scalar_prefetch=0,
            grid=(Jn, Kt),
            in_specs=[
                # activations [B_pad, K_pad], tiled along K
                pl.BlockSpec((B_pad, tk), lambda jn, k: (0, k)),
                # previous cell state [B_pad, N_pad], tiled along features
                pl.BlockSpec((B_pad, tn), lambda jn, k: (0, jn)),
                # fused weights [Jn, K_pad, 4*tn], tiled along (features, K)
                pl.BlockSpec((None, tk, 4 * tn), lambda jn, k: (jn, k, 0)),
            ],
            out_specs=tuple(out_specs),
            scratch_shapes=[pltpu.VMEM((B_pad, 4 * tn), jnp.float32)],
        ),
        compiler_params=pltpu.CompilerParams(
            dimension_semantics=("parallel", "arbitrary")),
    )(xh, cp, w_fused)

    c = outs[0][:B, :N].reshape(B, OC, OD)
    h = outs[1][:B, :N].reshape(B, OC, OD)
    if return_xs:
        xs = outs[2][:, :B, :N].reshape(4, B, OC, OD)
        return c, h, xs
    return c, h


def lstm_op_forward(x, c_p, h_p, xOps, hOps):
    """Convenience one-shot path (prep + step). For sequences, call
    prepare_lstm_op_weights once and lstm_op_step per timestep."""
    w_fused = prepare_lstm_op_weights(xOps, hOps)
    return lstm_op_step(x, c_p, h_p, w_fused)


def reference_forward(x, c_p, h_p, xOps, hOps):
    """Pure-JAX reference with the same semantics (for validation)."""
    xs = (jnp.einsum('goidj,bij->gbod', xOps, x)
          + jnp.einsum('gopde,bpe->gbod', hOps, h_p))
    i_g = jax.nn.sigmoid(xs[0])
    f_g = jax.nn.sigmoid(xs[1])
    g_g = jnp.tanh(xs[2])
    o_g = jax.nn.sigmoid(xs[3])
    c = f_g * c_p + i_g * g_g
    h = o_g * jnp.tanh(c)
    return c, h, xs


if __name__ == "__main__":
    # Small shapes consistent with the module's constructor.
    B, IC, ID = 2, 4, 16       # batch, input_channels, input_dim
    OC, OD = 4, 32             # output_channels, output_dim

    state_size = B * IC * OC * OD
    xOp_state_size = state_size * ID
    hOp_state_size = state_size * OD

    key = jax.random.PRNGKey(0)
    k_x, k_xops, k_hops = jax.random.split(key, 3)

    x = jax.random.normal(k_x, (B, IC, ID), dtype=jnp.float32)

    # Deterministic parameter init mirroring the module's __init__.
    xOps = jax.random.normal(k_xops, (4, OC, IC, OD, ID), dtype=jnp.float32)
    xOps = xOps / math.sqrt(xOp_state_size)
    hOps = jax.random.normal(k_hops, (4, OC, OC, OD, OD), dtype=jnp.float32)
    hOps = hOps / math.sqrt(hOp_state_size)

    c0 = jnp.zeros((B, OC, OD), dtype=jnp.float32)
    h0 = jnp.full((B, OC, OD), 1.0, dtype=jnp.float32) / (B * OC * OD)

    # Weight prep hoisted out of the per-step path (run once per parameter set).
    w_fused = prepare_lstm_op_weights(xOps, hOps)

    c, h, xs = lstm_op_step(x, c0, h0, w_fused)
    jax.block_until_ready((c, h, xs))

    c_ref, h_ref, xs_ref = reference_forward(x, c0, h0, xOps, hOps)
    assert jnp.allclose(c, c_ref, atol=1e-5, rtol=1e-5)
    assert jnp.allclose(h, h_ref, atol=1e-5, rtol=1e-5)
    assert jnp.allclose(xs, xs_ref, atol=1e-5, rtol=1e-5)

    # Also exercise the reduced-writeback path (no Xs output).
    c2, h2 = lstm_op_step(x, c0, h0, w_fused, return_xs=False)
    jax.block_until_ready((c2, h2))
    assert jnp.allclose(c2, c_ref, atol=1e-5, rtol=1e-5)
    assert jnp.allclose(h2, h_ref, atol=1e-5, rtol=1e-5)

    print("KERNEL_OK")
</pallas_src>

<mosaic_0001>
module attributes {stable_mosaic.version = 11 : i64} {
  func.func @_lstm_op_kernel(%arg0: i32, %arg1: i32, %arg2: memref<8x256xf32, #tpu.memory_space<vmem>>, %arg3: memref<8x128xf32, #tpu.memory_space<vmem>>, %arg4: memref<1x256x512xf32, #tpu.memory_space<vmem>>, %arg5: memref<8x128xf32, #tpu.memory_space<vmem>>, %arg6: memref<8x128xf32, #tpu.memory_space<vmem>>, %arg7: memref<4x8x128xf32, #tpu.memory_space<vmem>>, %arg8: memref<8x512xf32, #tpu.memory_space<vmem>>) attributes {dimension_semantics = [#tpu.dimension_semantics<parallel>, #tpu.dimension_semantics<arbitrary>], iteration_bounds = array<i64: 1, 1>, scalar_prefetch = 0 : i64, scratch_operands = 1 : i64, tpu.core_type = #tpu.core_type<tc>, window_params = [{transform_indices = @transform_0, window_bounds = array<i64: 8, 256>}, {transform_indices = @transform_1, window_bounds = array<i64: 8, 128>}, {transform_indices = @transform_2, window_bounds = array<i64: 1, 256, 512>}, {transform_indices = @transform_3, window_bounds = array<i64: 8, 128>}, {transform_indices = @transform_4, window_bounds = array<i64: 8, 128>}, {transform_indices = @transform_5, window_bounds = array<i64: 4, 8, 128>}]} {
    %c0_i32 = arith.constant 0 : i32
    %0 = arith.cmpi eq, %arg1, %c0_i32 : i32
    %1 = arith.extui %0 : i1 to i32
    %c0_i32_0 = arith.constant 0 : i32
    %2 = arith.cmpi ne, %1, %c0_i32_0 : i32
    scf.if %2 {
      %cst_11 = arith.constant 0.000000e+00 : f32
      %13 = vector.broadcast %cst_11 : f32 to vector<8x512xf32>
      %c0_12 = arith.constant 0 : index
      %c0_13 = arith.constant 0 : index
      %14 = vector.load %arg8[%c0_12, %c0_13] : memref<8x512xf32, #tpu.memory_space<vmem>>, vector<8x512xf32>
      tpu.vector_store %arg8[%c0_12, %c0_13], %13 {strides = array<i32>} : memref<8x512xf32, #tpu.memory_space<vmem>>, vector<8x512xf32>,
    } else {
    }
    %c0 = arith.constant 0 : index
    %c0_1 = arith.constant 0 : index
    %3 = vector.load %arg8[%c0, %c0_1] : memref<8x512xf32, #tpu.memory_space<vmem>>, vector<8x512xf32>
    %c0_2 = arith.constant 0 : index
    %c0_3 = arith.constant 0 : index
    %4 = vector.load %arg2[%c0_2, %c0_3] : memref<8x256xf32, #tpu.memory_space<vmem>>, vector<8x256xf32>
    %c0_4 = arith.constant 0 : index
    %c0_5 = arith.constant 0 : index
    %c0_6 = arith.constant 0 : index
    %5 = vector.load %arg4[%c0_4, %c0_5, %c0_6] : memref<1x256x512xf32, #tpu.memory_space<vmem>>, vector<1x256x512xf32>
    %6 = vector.shape_cast %5 : vector<1x256x512xf32> to vector<256x512xf32>
    %cst = arith.constant dense<0.000000e+00> : vector<8x512xf32>
    %7 = tpu.matmul %4, %6, %cst {dimension_numbers = #tpu.dot_dimension_numbers<[1], [0], [0], [1], [0, 0, 1, 1], [], []>} : vector<8x256xf32>, vector<256x512xf32>, vector<8x512xf32> -> vector<8x512xf32>
    %8 = arith.addf %3, %7 : vector<8x512xf32>
    %c0_7 = arith.constant 0 : index
    %c0_8 = arith.constant 0 : index
    %9 = vector.load %arg8[%c0_7, %c0_8] : memref<8x512xf32, #tpu.memory_space<vmem>>, vector<8x512xf32>
    tpu.vector_store %arg8[%c0_7, %c0_8], %8 {strides = array<i32>} : memref<8x512xf32, #tpu.memory_space<vmem>>, vector<8x512xf32>,
    %c0_i32_9 = arith.constant 0 : i32
    %10 = arith.cmpi eq, %arg1, %c0_i32_9 : i32
    %11 = arith.extui %10 : i1 to i32
    %c0_i32_10 = arith.constant 0 : i32
    %12 = arith.cmpi ne, %11, %c0_i32_10 : i32
    scf.if %12 {
      %c0_11 = arith.constant 0 : index
      %c0_12 = arith.constant 0 : index
      %13 = vector.load %arg8[%c0_11, %c0_12] : memref<8x512xf32, #tpu.memory_space<vmem>>, vector<8x512xf32>
      %14 = vector.extract_strided_slice %13 {offsets = [0, 0], sizes = [8, 128], strides = [1, 1]} : vector<8x512xf32> to vector<8x128xf32>
      %15 = vector.extract_strided_slice %13 {offsets = [0, 128], sizes = [8, 128], strides = [1, 1]} : vector<8x512xf32> to vector<8x128xf32>
      %16 = vector.extract_strided_slice %13 {offsets = [0, 256], sizes = [8, 128], strides = [1, 1]} : vector<8x512xf32> to vector<8x128xf32>
      %17 = vector.extract_strided_slice %13 {offsets = [0, 384], sizes = [8, 128], strides = [1, 1]} : vector<8x512xf32> to vector<8x128xf32>
      %c0_13 = arith.constant 0 : index
      %c0_14 = arith.constant 0 : index
      %c0_15 = arith.constant 0 : index
      %18 = vector.load %arg7[%c0_13, %c0_14, %c0_15] : memref<4x8x128xf32, #tpu.memory_space<vmem>>, vector<1x8x128xf32>
      %19 = vector.shape_cast %18 : vector<1x8x128xf32> to vector<8x128xf32>
      %20 = vector.shape_cast %14 : vector<8x128xf32> to vector<1x8x128xf32>
      tpu.vector_store %arg7[%c0_13, %c0_14, %c0_15], %20 {strides = array<i32>} : memref<4x8x128xf32, #tpu.memory_space<vmem>>, vector<1x8x128xf32>,
      %c1 = arith.constant 1 : index
      %c0_16 = arith.constant 0 : index
      %c0_17 = arith.constant 0 : index
      %21 = vector.load %arg7[%c1, %c0_16, %c0_17] : memref<4x8x128xf32, #tpu.memory_space<vmem>>, vector<1x8x128xf32>
      %22 = vector.shape_cast %21 : vector<1x8x128xf32> to vector<8x128xf32>
      %23 = vector.shape_cast %15 : vector<8x128xf32> to vector<1x8x128xf32>
      tpu.vector_store %arg7[%c1, %c0_16, %c0_17], %23 {strides = array<i32>} : memref<4x8x128xf32, #tpu.memory_space<vmem>>, vector<1x8x128xf32>,
      %c2 = arith.constant 2 : index
      %c0_18 = arith.constant 0 : index
      %c0_19 = arith.constant 0 : index
      %24 = vector.load %arg7[%c2, %c0_18, %c0_19] : memref<4x8x128xf32, #tpu.memory_space<vmem>>, vector<1x8x128xf32>
      %25 = vector.shape_cast %24 : vector<1x8x128xf32> to vector<8x128xf32>
      %26 = vector.shape_cast %16 : vector<8x128xf32> to vector<1x8x128xf32>
      tpu.vector_store %arg7[%c2, %c0_18, %c0_19], %26 {strides = array<i32>} : memref<4x8x128xf32, #tpu.memory_space<vmem>>, vector<1x8x128xf32>,
      %c3 = arith.constant 3 : index
      %c0_20 = arith.constant 0 : index
      %c0_21 = arith.constant 0 : index
      %27 = vector.load %arg7[%c3, %c0_20, %c0_21] : memref<4x8x128xf32, #tpu.memory_space<vmem>>, vector<1x8x128xf32>
      %28 = vector.shape_cast %27 : vector<1x8x128xf32> to vector<8x128xf32>
      %29 = vector.shape_cast %17 : vector<8x128xf32> to vector<1x8x128xf32>
      tpu.vector_store %arg7[%c3, %c0_20, %c0_21], %29 {strides = array<i32>} : memref<4x8x128xf32, #tpu.memory_space<vmem>>, vector<1x8x128xf32>,
      %30 = arith.negf %14 : vector<8x128xf32>
      %31 = math.exp %30 : vector<8x128xf32>
      %cst_22 = arith.constant 1.000000e+00 : f32
      %32 = vector.broadcast %cst_22 : f32 to vector<8x128xf32>
      %33 = arith.addf %32, %31 : vector<8x128xf32>
      %34 = arith.divf %32, %33 : vector<8x128xf32>
      %35 = arith.negf %15 : vector<8x128xf32>
      %36 = math.exp %35 : vector<8x128xf32>
      %cst_23 = arith.constant 1.000000e+00 : f32
      %37 = vector.broadcast %cst_23 : f32 to vector<8x128xf32>
      %38 = arith.addf %37, %36 : vector<8x128xf32>
      %39 = arith.divf %37, %38 : vector<8x128xf32>
      %40 = math.tanh %16 : vector<8x128xf32>
      %41 = arith.negf %17 : vector<8x128xf32>
      %42 = math.exp %41 : vector<8x128xf32>
      %cst_24 = arith.constant 1.000000e+00 : f32
      %43 = vector.broadcast %cst_24 : f32 to vector<8x128xf32>
      %44 = arith.addf %43, %42 : vector<8x128xf32>
      %45 = arith.divf %43, %44 : vector<8x128xf32>
      %c0_25 = arith.constant 0 : index
      %c0_26 = arith.constant 0 : index
      %46 = vector.load %arg3[%c0_25, %c0_26] : memref<8x128xf32, #tpu.memory_space<vmem>>, vector<8x128xf32>
      %47 = arith.mulf %39, %46 : vector<8x128xf32>
      %48 = arith.mulf %34, %40 : vector<8x128xf32>
      %49 = arith.addf %47, %48 : vector<8x128xf32>
      %c0_27 = arith.constant 0 : index
      %c0_28 = arith.constant 0 : index
      %50 = vector.load %arg5[%c0_27, %c0_28] : memref<8x128xf32, #tpu.memory_space<vmem>>, vector<8x128xf32>
      tpu.vector_store %arg5[%c0_27, %c0_28], %49 {strides = array<i32>} : memref<8x128xf32, #tpu.memory_space<vmem>>, vector<8x128xf32>,
      %51 = math.tanh %49 : vector<8x128xf32>
      %52 = arith.mulf %45, %51 : vector<8x128xf32>
      %c0_29 = arith.constant 0 : index
      %c0_30 = arith.constant 0 : index
      %53 = vector.load %arg6[%c0_29, %c0_30] : memref<8x128xf32, #tpu.memory_space<vmem>>, vector<8x128xf32>
      tpu.vector_store %arg6[%c0_29, %c0_30], %52 {strides = array<i32>} : memref<8x128xf32, #tpu.memory_space<vmem>>, vector<8x128xf32>,
    } else {
    }
    return
  }
  func.func @transform_0(%arg0: i32, %arg1: i32) -> (i32, i32) {
    %c0_i32 = arith.constant 0 : i32
    %c0_i32_0 = arith.constant 0 : i32
    return %c0_i32, %arg1 : i32, i32
  }
  func.func @transform_1(%arg0: i32, %arg1: i32) -> (i32, i32) {
    %c0_i32 = arith.constant 0 : i32
    %c0_i32_0 = arith.constant 0 : i32
    return %c0_i32, %arg0 : i32, i32
  }
  func.func @transform_2(%arg0: i32, %arg1: i32) -> (i32, i32, i32) {
    %c0_i32 = arith.constant 0 : i32
    %c0_i32_0 = arith.constant 0 : i32
    return %arg0, %arg1, %c0_i32 : i32, i32, i32
  }
  func.func @transform_3(%arg0: i32, %arg1: i32) -> (i32, i32) {
    %c0_i32 = arith.constant 0 : i32
    %c0_i32_0 = arith.constant 0 : i32
    return %c0_i32, %arg0 : i32, i32
  }
  func.func @transform_4(%arg0: i32, %arg1: i32) -> (i32, i32) {
    %c0_i32 = arith.constant 0 : i32
    %c0_i32_0 = arith.constant 0 : i32
    return %c0_i32, %arg0 : i32, i32
  }
  func.func @transform_5(%arg0: i32, %arg1: i32) -> (i32, i32, i32) {
    %c0_i32 = arith.constant 0 : i32
    %c0_i32_0 = arith.constant 0 : i32
    %c0_i32_1 = arith.constant 0 : i32
    return %c0_i32, %c0_i32_0, %arg0 : i32, i32, i32
  }
}

</mosaic_0001>

<bundles_post_ra>
// kernel: lstm_op_step.1
= control target key start
LH: loop header
LB: loop body
LE: loop exit
PB: predicated region body
PF: predicated region fallthrough
CT: control target
= control target key end

     0   :  { %11 = vsyncpa [#allocation4], 0  ;;  %s487_s21 = smov [#allocation3]   ;;  %s488_s23 = smov 512   ;;  %s574_s0 = inlined_call_operand.vmem [shape: f32[8,256], index: 0, kind: input, shape index: {}]   ;;  %s575_s1 = inlined_call_operand.vmem [shape: f32[8,128], index: 1, kind: input, shape index: {}]   ;;  %s576_s2 = inlined_call_operand.hbm [shape: f32[1,256,512], index: 2, kind: input, shape index: {}]   ;;  %s577_s3 = inlined_call_operand.vmem [shape: f32[8,128], index: 3, kind: output, shape index: {0}]   ;;  %s578_s4 = inlined_call_operand.vmem [shape: f32[8,128], index: 4, kind: output, shape index: {1}]   ;;  %s579_s5 = inlined_call_operand.vmem [shape: f32[4,8,128], index: 5, kind: output, shape index: {2}]  }
   0x1   :  { %s20_s20 = sshll.u32 %s576_s2, 4  ;;  %s22_s22 = sshll.u32 %s487_s21, 4  ;;  %s21_s20 = int_to_ptr.hbm [resolvable:$true] %s20_s20  ;;  %s23_s22 = int_to_ptr.vmem [resolvable:$true] %s22_s22 }
   0x2   :  { %s489_s24 = smov 32  }
   0x3   :  { %28 = dma.hbm_to_vmem [thread:$0]  %s21_s20, 16384, %s23_s22, [#allocation4], %s488_s23, %s488_s23, %s489_s24  }
   0x4   :  { %485 = dma.done.wait [#allocation4], 16384  }
   0x5   :  { %486 = vsyncadd [#allocation4], 4294950912  ;;  %v108_v0 = vld [vmem:[#allocation3 + $0x1e8] sm:$0xff]  ;;  %v107_v4 = vld [vmem:[#allocation3 + $0x1e0] sm:$0xff] }
   0x6   :  { %v172_v1 = vld [vmem:[#allocation3 + $0x3e8] sm:$0xff]  ;;  %215 = vmatpush.msra.mxu2 %v108_v0  ;;  %v171_v5 = vld [vmem:[#allocation3 + $0x3e0] sm:$0xff]  ;;  %175 = vmatpush.msra.mxu0 %v107_v4  ;;  %v110_v62 = vld [vmem:[#allocation3 + $0x1f8] sm:$0xff] }
   0x7   :  { %v104_v2 = vld [vmem:[#allocation3 + $0x1c8] sm:$0xff]  ;;  %235 = vmatpush.msra.mxu3 %v172_v1  ;;  %195 = vmatpush.msra.mxu1 %v171_v5  ;;  %v103_v8 = vld [vmem:[#allocation3 + $0x1c0] sm:$0xff]  ;;  %v174_v63 = vld [vmem:[#allocation3 + $0x3f8] sm:$0xff] }
   0x8   :  { %v168_v3 = vld [vmem:[#allocation3 + $0x3c8] sm:$0xff]  ;;  %216 = vmatpush.msra.mxu2 %v104_v2  ;;  %v167_v9 = vld [vmem:[#allocation3 + $0x3c0] sm:$0xff]  ;;  %176 = vmatpush.msra.mxu0 %v103_v8  ;;  %v106_v2 = vld [vmem:[#allocation3 + $0x1d8] sm:$0xff] }
   0x9   :  { %v100_v6 = vld [vmem:[#allocation3 + $0x1a8] sm:$0xff]  ;;  %236 = vmatpush.msra.mxu3 %v168_v3  ;;  %196 = vmatpush.msra.mxu1 %v167_v9  ;;  %v99_v12 = vld [vmem:[#allocation3 + $0x1a0] sm:$0xff]  ;;  %v170_v3 = vld [vmem:[#allocation3 + $0x3d8] sm:$0xff] }
   0xa   :  { %v164_v7 = vld [vmem:[#allocation3 + $0x3a8] sm:$0xff]  ;;  %v163_v13 = vld [vmem:[#allocation3 + $0x3a0] sm:$0xff]  ;;  %217 = vmatpush.msra.mxu2 %v100_v6  ;;  %177 = vmatpush.msra.mxu0 %v99_v12  ;;  %v109_v4 = vld [vmem:[#allocation3 + $0x1f0] sm:$0xff] }
   0xb   :  { %v96_v10 = vld [vmem:[#allocation3 + $0x188] sm:$0xff]  ;;  %237 = vmatpush.msra.mxu3 %v164_v7  ;;  %v95_v14 = vld [vmem:[#allocation3 + $0x180] sm:$0xff]  ;;  %197 = vmatpush.msra.mxu1 %v163_v13  ;;  %v173_v5 = vld [vmem:[#allocation3 + $0x3f0] sm:$0xff] }
   0xc   :  { %v160_v11 = vld [vmem:[#allocation3 + $0x388] sm:$0xff]  ;;  %v159_v15 = vld [vmem:[#allocation3 + $0x380] sm:$0xff]  ;;  %218 = vmatpush.msra.mxu2 %v96_v10  ;;  %178 = vmatpush.msra.mxu0 %v95_v14  ;;  %v102_v6 = vld [vmem:[#allocation3 + $0x1b8] sm:$0xff] }
   0xd   :  { %v92_v16 = vld [vmem:[#allocation3 + $0x168] sm:$0xff]  ;;  %238 = vmatpush.msra.mxu3 %v160_v11  ;;  %v91_v18 = vld [vmem:[#allocation3 + $0x160] sm:$0xff]  ;;  %198 = vmatpush.msra.mxu1 %v159_v15  ;;  %v166_v7 = vld [vmem:[#allocation3 + $0x3b8] sm:$0xff] }
   0xe   :  { %v156_v17 = vld [vmem:[#allocation3 + $0x368] sm:$0xff]  ;;  %v155_v19 = vld [vmem:[#allocation3 + $0x360] sm:$0xff]  ;;  %219 = vmatpush.msra.mxu2 %v92_v16  ;;  %179 = vmatpush.msra.mxu0 %v91_v18  ;;  %v105_v8 = vld [vmem:[#allocation3 + $0x1d0] sm:$0xff] }
   0xf   :  { %v88_v20 = vld [vmem:[#allocation3 + $0x148] sm:$0xff]  ;;  %239 = vmatpush.msra.mxu3 %v156_v17  ;;  %v87_v22 = vld [vmem:[#allocation3 + $0x140] sm:$0xff]  ;;  %199 = vmatpush.msra.mxu1 %v155_v19  ;;  %v169_v9 = vld [vmem:[#allocation3 + $0x3d0] sm:$0xff] }
  0x10   :  { %v152_v21 = vld [vmem:[#allocation3 + $0x348] sm:$0xff]  ;;  %v151_v23 = vld [vmem:[#allocation3 + $0x340] sm:$0xff]  ;;  %220 = vmatpush.msra.mxu2 %v88_v20  ;;  %180 = vmatpush.msra.mxu0 %v87_v22  ;;  %v98_v10 = vld [vmem:[#allocation3 + $0x198] sm:$0xff] }
  0x11   :  { %v84_v24 = vld [vmem:[#allocation3 + $0x128] sm:$0xff]  ;;  %240 = vmatpush.msra.mxu3 %v152_v21  ;;  %v83_v26 = vld [vmem:[#allocation3 + $0x120] sm:$0xff]  ;;  %200 = vmatpush.msra.mxu1 %v151_v23  ;;  %v162_v11 = vld [vmem:[#allocation3 + $0x398] sm:$0xff] }
  0x12   :  { %v148_v25 = vld [vmem:[#allocation3 + $0x328] sm:$0xff]  ;;  %v147_v27 = vld [vmem:[#allocation3 + $0x320] sm:$0xff]  ;;  %221 = vmatpush.msra.mxu2 %v84_v24  ;;  %181 = vmatpush.msra.mxu0 %v83_v26  ;;  %v101_v14 = vld [vmem:[#allocation3 + $0x1b0] sm:$0xff] }
  0x13   :  { %v80_v28 = vld [vmem:[#allocation3 + $0x108] sm:$0xff]  ;;  %241 = vmatpush.msra.mxu3 %v148_v25  ;;  %v79_v30 = vld [vmem:[#allocation3 + $0x100] sm:$0xff]  ;;  %201 = vmatpush.msra.mxu1 %v147_v27  ;;  %v165_v15 = vld [vmem:[#allocation3 + $0x3b0] sm:$0xff] }
  0x14   :  { %v144_v29 = vld [vmem:[#allocation3 + $0x308] sm:$0xff]  ;;  %v143_v31 = vld [vmem:[#allocation3 + $0x300] sm:$0xff]  ;;  %222 = vmatpush.msra.mxu2 %v80_v28  ;;  %182 = vmatpush.msra.mxu0 %v79_v30  ;;  %v94_v16 = vld [vmem:[#allocation3 + $0x178] sm:$0xff] }
  0x15   :  { %v76_v32 = vld [vmem:[#allocation3 + $0xe8] sm:$0xff]  ;;  %242 = vmatpush.msra.mxu3 %v144_v29  ;;  %v75_v34 = vld [vmem:[#allocation3 + $0xe0] sm:$0xff]  ;;  %202 = vmatpush.msra.mxu1 %v143_v31  ;;  %v158_v17 = vld [vmem:[#allocation3 + $0x378] sm:$0xff] }
  0x16   :  { %v140_v33 = vld [vmem:[#allocation3 + $0x2e8] sm:$0xff]  ;;  %v139_v35 = vld [vmem:[#allocation3 + $0x2e0] sm:$0xff]  ;;  %223 = vmatpush.msra.mxu2 %v76_v32  ;;  %183 = vmatpush.msra.mxu0 %v75_v34  ;;  %v97_v18 = vld [vmem:[#allocation3 + $0x190] sm:$0xff] }
  0x17   :  { %v72_v36 = vld [vmem:[#allocation3 + $0xc8] sm:$0xff]  ;;  %243 = vmatpush.msra.mxu3 %v140_v33  ;;  %v71_v38 = vld [vmem:[#allocation3 + $0xc0] sm:$0xff]  ;;  %203 = vmatpush.msra.mxu1 %v139_v35  ;;  %v161_v19 = vld [vmem:[#allocation3 + $0x390] sm:$0xff] }
  0x18   :  { %v136_v37 = vld [vmem:[#allocation3 + $0x2c8] sm:$0xff]  ;;  %v135_v39 = vld [vmem:[#allocation3 + $0x2c0] sm:$0xff]  ;;  %224 = vmatpush.msra.mxu2 %v72_v36  ;;  %184 = vmatpush.msra.mxu0 %v71_v38  ;;  %v90_v20 = vld [vmem:[#allocation3 + $0x158] sm:$0xff] }
  0x19   :  { %v68_v40 = vld [vmem:[#allocation3 + $0xa8] sm:$0xff]  ;;  %244 = vmatpush.msra.mxu3 %v136_v37  ;;  %v67_v42 = vld [vmem:[#allocation3 + $0xa0] sm:$0xff]  ;;  %204 = vmatpush.msra.mxu1 %v135_v39  ;;  %v154_v21 = vld [vmem:[#allocation3 + $0x358] sm:$0xff] }
  0x1a   :  { %v132_v41 = vld [vmem:[#allocation3 + $0x2a8] sm:$0xff]  ;;  %v131_v43 = vld [vmem:[#allocation3 + $0x2a0] sm:$0xff]  ;;  %225 = vmatpush.msra.mxu2 %v68_v40  ;;  %185 = vmatpush.msra.mxu0 %v67_v42  ;;  %v93_v22 = vld [vmem:[#allocation3 + $0x170] sm:$0xff] }
  0x1b   :  { %v64_v44 = vld [vmem:[#allocation3 + $0x88] sm:$0xff]  ;;  %245 = vmatpush.msra.mxu3 %v132_v41  ;;  %v63_v46 = vld [vmem:[#allocation3 + $0x80] sm:$0xff]  ;;  %205 = vmatpush.msra.mxu1 %v131_v43  ;;  %v157_v23 = vld [vmem:[#allocation3 + $0x370] sm:$0xff] }
  0x1c   :  { %v128_v45 = vld [vmem:[#allocation3 + $0x288] sm:$0xff]  ;;  %v127_v47 = vld [vmem:[#allocation3 + $0x280] sm:$0xff]  ;;  %226 = vmatpush.msra.mxu2 %v64_v44  ;;  %186 = vmatpush.msra.mxu0 %v63_v46  ;;  %v86_v24 = vld [vmem:[#allocation3 + $0x138] sm:$0xff] }
  0x1d   :  { %v60_v48 = vld [vmem:[#allocation3 + $0x68] sm:$0xff]  ;;  %246 = vmatpush.msra.mxu3 %v128_v45  ;;  %v59_v50 = vld [vmem:[#allocation3 + $0x60] sm:$0xff]  ;;  %206 = vmatpush.msra.mxu1 %v127_v47  ;;  %v150_v25 = vld [vmem:[#allocation3 + $0x338] sm:$0xff] }
  0x1e   :  { %v124_v49 = vld [vmem:[#allocation3 + $0x268] sm:$0xff]  ;;  %v123_v51 = vld [vmem:[#allocation3 + $0x260] sm:$0xff]  ;;  %227 = vmatpush.msra.mxu2 %v60_v48  ;;  %187 = vmatpush.msra.mxu0 %v59_v50  ;;  %v89_v26 = vld [vmem:[#allocation3 + $0x150] sm:$0xff] }
  0x1f   :  { %v56_v52 = vld [vmem:[#allocation3 + $0x48] sm:$0xff]  ;;  %247 = vmatpush.msra.mxu3 %v124_v49  ;;  %v55_v54 = vld [vmem:[#allocation3 + $0x40] sm:$0xff]  ;;  %207 = vmatpush.msra.mxu1 %v123_v51  ;;  %v153_v27 = vld [vmem:[#allocation3 + $0x350] sm:$0xff] }
  0x20   :  { %v120_v53 = vld [vmem:[#allocation3 + $0x248] sm:$0xff]  ;;  %v119_v55 = vld [vmem:[#allocation3 + $0x240] sm:$0xff]  ;;  %228 = vmatpush.msra.mxu2 %v56_v52  ;;  %188 = vmatpush.msra.mxu0 %v55_v54  ;;  %v82_v28 = vld [vmem:[#allocation3 + $0x118] sm:$0xff] }
  0x21   :  { %v52_v56 = vld [vmem:[#allocation3 + $0x28] sm:$0xff]  ;;  %248 = vmatpush.msra.mxu3 %v120_v53  ;;  %v51_v58 = vld [vmem:[#allocation3 + $0x20] sm:$0xff]  ;;  %208 = vmatpush.msra.mxu1 %v119_v55  ;;  %v146_v29 = vld [vmem:[#allocation3 + $0x318] sm:$0xff] }
  0x22   :  { %v116_v57 = vld [vmem:[#allocation3 + $0x228] sm:$0xff]  ;;  %v115_v59 = vld [vmem:[#allocation3 + $0x220] sm:$0xff]  ;;  %229 = vmatpush.msra.mxu2 %v52_v56  ;;  %189 = vmatpush.msra.mxu0 %v51_v58  ;;  %v85_v30 = vld [vmem:[#allocation3 + $0x130] sm:$0xff] }
  0x23   :  { %v48_v60 = vld [vmem:[#allocation3 + $0x8] sm:$0xff]  ;;  %249 = vmatpush.msra.mxu3 %v116_v57  ;;  %209 = vmatpush.msra.mxu1 %v115_v59  ;;  %v47_v0 = vld [vmem:[#allocation3] sm:$0xff]  ;;  %v149_v31 = vld [vmem:[#allocation3 + $0x330] sm:$0xff] }
  0x24   :  { %v112_v61 = vld [vmem:[#allocation3 + $0x208] sm:$0xff]  ;;  %v111_v1 = vld [vmem:[#allocation3 + $0x200] sm:$0xff]  ;;  %230 = vmatpush.msra.mxu2 %v48_v60  ;;  %190 = vmatpush.msra.mxu0 %v47_v0  ;;  %v78_v32 = vld [vmem:[#allocation3 + $0xf8] sm:$0xff] }
  0x25   :  { %250 = vmatpush.msra.mxu3 %v112_v61  ;;  %210 = vmatpush.msra.mxu1 %v111_v1  ;;  %v526_v12 = vld [vmem:[%s574_s0] sm:$0xff]  ;;  %v531_v13 = vld [vmem:[%s574_s0 + $0x8] sm:$0xff]  ;;  %v142_v33 = vld [vmem:[#allocation3 + $0x2f8] sm:$0xff] }
  0x26   :  { %295 = vmatpush.msrb.mxu2 %v110_v62  ;;  %255 = vmatpush.msrb.mxu0 %v109_v4  ;;  %v81_v34 = vld [vmem:[#allocation3 + $0x110] sm:$0xff]  ;;  %v74_v36 = vld [vmem:[#allocation3 + $0xd8] sm:$0xff] }
  0x27   :  { %315 = vmatpush.msrb.mxu3 %v174_v63  ;;  %275 = vmatpush.msrb.mxu1 %v173_v5  ;;  %v145_v35 = vld [vmem:[#allocation3 + $0x310] sm:$0xff]  ;;  %v138_v37 = vld [vmem:[#allocation3 + $0x2d8] sm:$0xff] }
  0x28   :  { %296 = vmatpush.msrb.mxu2 %v106_v2  ;;  %256 = vmatpush.msrb.mxu0 %v105_v8  ;;  %v77_v38 = vld [vmem:[#allocation3 + $0xf0] sm:$0xff]  ;;  %v70_v40 = vld [vmem:[#allocation3 + $0xb8] sm:$0xff] }
  0x29   :  { %316 = vmatpush.msrb.mxu3 %v170_v3  ;;  %276 = vmatpush.msrb.mxu1 %v169_v9  ;;  %v141_v39 = vld [vmem:[#allocation3 + $0x2f0] sm:$0xff]  ;;  %v134_v41 = vld [vmem:[#allocation3 + $0x2b8] sm:$0xff] }
  0x2a   :  { %297 = vmatpush.msrb.mxu2 %v102_v6  ;;  %251 = vmatmul.f32.vlgmr.msra.gmra.mxu3 %v531_v13  ;;  %v73_v42 = vld [vmem:[#allocation3 + $0xd0] sm:$0xff]  ;;  %v66_v44 = vld [vmem:[#allocation3 + $0x98] sm:$0xff] }
  0x2b   :  { %317 = vmatpush.msrb.mxu3 %v166_v7  ;;  %231 = vmatmul.f32.vlgmr.msra.gmra.mxu2 %v526_v12  ;;  %v137_v43 = vld [vmem:[#allocation3 + $0x2d0] sm:$0xff]  ;;  %v130_v45 = vld [vmem:[#allocation3 + $0x298] sm:$0xff] }
  0x2c   :  { %298 = vmatpush.msrb.mxu2 %v98_v10  ;;  %257 = vmatpush.msrb.mxu0 %v101_v14  ;;  %v69_v46 = vld [vmem:[#allocation3 + $0xb0] sm:$0xff]  ;;  %v62_v48 = vld [vmem:[#allocation3 + $0x78] sm:$0xff] }
  0x2d   :  { %318 = vmatpush.msrb.mxu3 %v162_v11  ;;  %277 = vmatpush.msrb.mxu1 %v165_v15  ;;  %v133_v47 = vld [vmem:[#allocation3 + $0x2b0] sm:$0xff]  ;;  %v126_v49 = vld [vmem:[#allocation3 + $0x278] sm:$0xff] }
  0x2e   :  { %299 = vmatpush.msrb.mxu2 %v94_v16  ;;  %258 = vmatpush.msrb.mxu0 %v97_v18  ;;  %v65_v50 = vld [vmem:[#allocation3 + $0x90] sm:$0xff]  ;;  %v58_v52 = vld [vmem:[#allocation3 + $0x58] sm:$0xff] }
  0x2f   :  { %319 = vmatpush.msrb.mxu3 %v158_v17  ;;  %278 = vmatpush.msrb.mxu1 %v161_v19  ;;  %v129_v51 = vld [vmem:[#allocation3 + $0x290] sm:$0xff]  ;;  %v122_v53 = vld [vmem:[#allocation3 + $0x258] sm:$0xff] }
  0x30   :  { %300 = vmatpush.msrb.mxu2 %v90_v20  ;;  %259 = vmatpush.msrb.mxu0 %v93_v22  ;;  %v61_v54 = vld [vmem:[#allocation3 + $0x70] sm:$0xff]  ;;  %v54_v56 = vld [vmem:[#allocation3 + $0x38] sm:$0xff] }
  0x31   :  { %320 = vmatpush.msrb.mxu3 %v154_v21  ;;  %279 = vmatpush.msrb.mxu1 %v157_v23  ;;  %v125_v55 = vld [vmem:[#allocation3 + $0x270] sm:$0xff]  ;;  %v118_v57 = vld [vmem:[#allocation3 + $0x238] sm:$0xff] }
  0x32   :  { %301 = vmatpush.msrb.mxu2 %v86_v24  ;;  %191 = vmatmul.f32.vlgmr.msra.gmra.mxu0 %v526_v12  ;;  %v57_v58 = vld [vmem:[#allocation3 + $0x50] sm:$0xff]  ;;  %v50_v60 = vld [vmem:[#allocation3 + $0x18] sm:$0xff] }
  0x33   :  { %321 = vmatpush.msrb.mxu3 %v150_v25  ;;  %211 = vmatmul.f32.vlgmr.msra.gmra.mxu1 %v531_v13  ;;  %v121_v59 = vld [vmem:[#allocation3 + $0x250] sm:$0xff]  ;;  %v114_v61 = vld [vmem:[#allocation3 + $0x218] sm:$0xff] }
  0x34   :  { %260 = vmatpush.msrb.mxu0 %v89_v26  ;;  %280 = vmatpush.msrb.mxu1 %v153_v27  ;;  %v53_v62 = vld [vmem:[#allocation3 + $0x30] sm:$0xff] }
  0x35   :  { %302 = vmatpush.msrb.mxu2 %v82_v28  ;;  %322 = vmatpush.msrb.mxu3 %v146_v29  ;;  %v117_v63 = vld [vmem:[#allocation3 + $0x230] sm:$0xff] }
  0x36   :  { %261 = vmatpush.msrb.mxu0 %v85_v30  ;;  %281 = vmatpush.msrb.mxu1 %v149_v31  ;;  %v49_v0 = vld [vmem:[#allocation3 + $0x10] sm:$0xff] }
  0x37   :  { %303 = vmatpush.msrb.mxu2 %v78_v32  ;;  %323 = vmatpush.msrb.mxu3 %v142_v33  ;;  %v113_v1 = vld [vmem:[#allocation3 + $0x210] sm:$0xff] }
  0x38   :  { %262 = vmatpush.msrb.mxu0 %v81_v34  ;;  %282 = vmatpush.msrb.mxu1 %v145_v35 }
  0x39   :  { %304 = vmatpush.msrb.mxu2 %v74_v36  ;;  %324 = vmatpush.msrb.mxu3 %v138_v37  ;;  %v415_v37 = vld [vmem:[%s575_s1] sm:$0xff] }
  0x3a   :  { %263 = vmatpush.msrb.mxu0 %v77_v38  ;;  %283 = vmatpush.msrb.mxu1 %v141_v39 }
  0x3b   :  { %305 = vmatpush.msrb.mxu2 %v70_v40  ;;  %325 = vmatpush.msrb.mxu3 %v134_v41 }
  0x3c   :  { %264 = vmatpush.msrb.mxu0 %v73_v42  ;;  %284 = vmatpush.msrb.mxu1 %v137_v43 }
  0x3d   :  { %306 = vmatpush.msrb.mxu2 %v66_v44  ;;  %326 = vmatpush.msrb.mxu3 %v130_v45 }
  0x3e   :  { %265 = vmatpush.msrb.mxu0 %v69_v46  ;;  %285 = vmatpush.msrb.mxu1 %v133_v47 }
  0x3f   :  { %307 = vmatpush.msrb.mxu2 %v62_v48  ;;  %327 = vmatpush.msrb.mxu3 %v126_v49 }
  0x40   :  { %266 = vmatpush.msrb.mxu0 %v65_v50  ;;  %286 = vmatpush.msrb.mxu1 %v129_v51 }
  0x41   :  { %308 = vmatpush.msrb.mxu2 %v58_v52  ;;  %328 = vmatpush.msrb.mxu3 %v122_v53 }
  0x42   :  { %267 = vmatpush.msrb.mxu0 %v61_v54  ;;  %287 = vmatpush.msrb.mxu1 %v125_v55 }
  0x43   :  { %309 = vmatpush.msrb.mxu2 %v54_v56  ;;  %329 = vmatpush.msrb.mxu3 %v118_v57 }
  0x44   :  { %268 = vmatpush.msrb.mxu0 %v57_v58  ;;  %288 = vmatpush.msrb.mxu1 %v121_v59 }
  0x45   :  { %310 = vmatpush.msrb.mxu2 %v50_v60  ;;  %330 = vmatpush.msrb.mxu3 %v114_v61 }
  0x46   :  { %269 = vmatpush.msrb.mxu0 %v53_v62  ;;  %289 = vmatpush.msrb.mxu1 %v117_v63 }
  0x47   :  { %311 = vmatmul.f32.vlgmr.msrb.gmra.mxu2 %v526_v12  ;;  %331 = vmatmul.f32.vlgmr.msrb.gmra.mxu3 %v531_v13 }
  0x48   :  { %270 = vmatpush.msrb.mxu0 %v49_v0  ;;  %290 = vmatpush.msrb.mxu1 %v113_v1 }
  0x49   :  { %271 = vmatmul.f32.vlgmr.msrb.gmra.mxu0 %v526_v12  ;;  %291 = vmatmul.f32.vlgmr.msrb.gmra.mxu1 %v531_v13 }
  0xad   :  { %v252_v3 = vpop.f32.mrf.mxu3 }
  0xae   :  { %v232_v2 = vpop.f32.mrf.mxu2 }
  0xaf   :  { %v192_v4 = vpop.f32.mrf.mxu0  ;;  %v253_v6 = vadd.f32 %v252_v3, %v232_v2 }
  0xb0   :  { %v212_v5 = vpop.f32.mrf.mxu1 }
  0xb1   :  { %v213_v7 = vadd.f32 %v212_v5, %v192_v4  ;;  %436 = vst [vmem:[%s579_s5 + $0x8] sm:$0xff] %v253_v6  ;;  %v440_v8 = vmul.f32 -1.442695, %v253_v6 }
  0xb3   :  { %350 = vst [vmem:[%s579_s5] sm:$0xff] %v213_v7  ;;  %v439_v9 = vmul.f32 -1.442695, %v213_v7  ;;  %445 = vpow2.f32 %v440_v8 }
  0xb5   :  { %447 = vpow2.f32 %v439_v9 }
  0xb9   :  { %v446_v10 = vpop.eup %445 }
  0xba   :  { %v379_v12 = vadd.f32 1.0, %v446_v10 }
  0xbb   :  { %v448_v11 = vpop.eup %447 }
  0xbc   :  { %v360_v13 = vadd.f32 1.0, %v448_v11  ;;  %449 = vrcp.f32 %v379_v12  ;;  %vm385_vm0 = vweird.f32 %v379_v12  ;;  %v391_v18 = vand.u32 2147483648, %v379_v12 }
  0xbd   :  { %v389_v19 = vand.u32 2147483647, %v379_v12 }
  0xbe   :  { %451 = vrcp.f32 %v360_v13  ;;  %vm366_vm2 = vweird.f32 %v360_v13  ;;  %v372_v23 = vand.u32 2147483648, %v360_v13  ;;  %v370_v26 = vand.u32 2147483647, %v360_v13 }
  0xbf   :  { %v392_v29 = vor.u32 1.1754944e-38, %v391_v18  ;;  %vm390_vm6 = vcmp.eq.f32.partialorder %v389_v19, 8.507059e+37 }
  0xc0   :  { %v373_v32 = vor.u32 1.1754944e-38, %v372_v23  ;;  %vm371_vm7 = vcmp.eq.f32.partialorder %v370_v26, 8.507059e+37 }
  0xc2   :  { %v450_v14 = vpop.eup %449 }
  0xc3   :  { %v381_v16 = vmul.f32 %v450_v14, %v379_v12  ;;  %vm386_vm1 = vweird.f32 %v450_v14 }
  0xc4   :  { %v452_v15 = vpop.eup %451  ;;  %vm547_vm4 = vmor %vm385_vm0, %vm386_vm1 }
  0xc5   :  { %v362_v17 = vmul.f32 %v452_v15, %v360_v13  ;;  %v382_v20 = vsub.f32 1.0, %v381_v16  ;;  %vm367_vm3 = vweird.f32 %v452_v15 }
  0xc6   :  { %v272_v21 = vpop.f32.mrf.mxu0  ;;  %v292_v22 = vpop.f32.mrf.mxu1  ;;  %vm554_vm5 = vmor %vm366_vm2, %vm367_vm3 }
  0xc7   :  { %v363_v24 = vsub.f32 1.0, %v362_v17  ;;  %v293_v25 = vadd.f32 %v292_v22, %v272_v21  ;;  %v383_v27 = vmul.f32 %v450_v14, %v382_v20 }
  0xc9   :  { %437 = vst [vmem:[%s579_s5 + $0x10] sm:$0xff] %v293_v25  ;;  %v364_v30 = vmul.f32 %v452_v15, %v363_v24  ;;  %453 = vtanh.f32 %v293_v25  ;;  %v384_v33 = vadd.f32 %v450_v14, %v383_v27 }
  0xca   :  { %v312_v34 = vpop.f32.mrf.mxu2  ;;  %v332_v35 = vpop.f32.mrf.mxu3 }
  0xcb   :  { %v365_v36 = vadd.f32 %v452_v15, %v364_v30  ;;  %v333_v38 = vadd.f32 %v332_v35, %v312_v34  ;;  %v388_v39 = vsel %vm547_vm4, %v450_v14, %v384_v33 }
  0xcc   :  { %v393_v41 = vsel %vm390_vm6, %v392_v29, %v388_v39 }
  0xcd   :  { %v369_v40 = vsel %vm554_vm5, %v452_v15, %v365_v36  ;;  %438 = vst [vmem:[%s579_s5 + $0x18] sm:$0xff] %v333_v38  ;;  %v441_v42 = vmul.f32 -1.442695, %v333_v38  ;;  %v416_v44 = vmul.f32 %v415_v37, %v393_v41 }
  0xce   :  { %v374_v43 = vsel %vm371_vm7, %v373_v32, %v369_v40 }
  0xcf   :  { %v454_v45 = vpop.eup %453  ;;  %455 = vpow2.f32 %v441_v42 }
  0xd0   :  { %v417_v46 = vmul.f32 %v454_v45, %v374_v43 }
  0xd2   :  { %v418_v47 = vadd.f32 %v417_v46, %v416_v44 }
  0xd4   :  { %419 = vst [vmem:[%s577_s3] sm:$0xff] %v418_v47 }
  0xd5   :  { %v456_v48 = vpop.eup %455 }
  0xd6   :  { %v399_v49 = vadd.f32 1.0, %v456_v48 }
  0xd8   :  { %457 = vrcp.f32 %v399_v49  ;;  %v411_v53 = vand.u32 2147483648, %v399_v49  ;;  %v409_v55 = vand.u32 2147483647, %v399_v49  ;;  %vm405_vm9 = vweird.f32 %v399_v49 }
  0xd9   :  { %459 = vtanh.f32 %v418_v47 }
  0xda   :  { %v412_v57 = vor.u32 1.1754944e-38, %v411_v53  ;;  %vm410_vm11 = vcmp.eq.f32.partialorder %v409_v55, 8.507059e+37 }
  0xde   :  { %v458_v50 = vpop.eup %457 }
  0xdf   :  { %v401_v51 = vmul.f32 %v458_v50, %v399_v49  ;;  %vm406_vm8 = vweird.f32 %v458_v50  ;;  %v460_v59 = vpop.eup %459 }
  0xe0   :  { %vm407_vm10 = vmor %vm405_vm9, %vm406_vm8 }
  0xe1   :  { %v402_v52 = vsub.f32 1.0, %v401_v51 }
  0xe3   :  { %v403_v54 = vmul.f32 %v458_v50, %v402_v52 }
  0xe5   :  { %v404_v56 = vadd.f32 %v458_v50, %v403_v54 }
  0xe7   :  { %v408_v58 = vsel %vm407_vm10, %v458_v50, %v404_v56 }
  0xe8   :  { %v413_v60 = vsel %vm410_vm11, %v412_v57, %v408_v58 }
  0xe9   :  { %v421_v61 = vmul.f32 %v460_v59, %v413_v60 }
  0xeb   :  { %422 = vst [vmem:[%s578_s4] sm:$0xff] %v421_v61 }
  0xec   :  { %435 = vsyncpa [#allocation4], 1 }

</bundles_post_ra>
